<compile_context>
chip_gen: v5e
topology: v5e:2x2
jax: 0.10.0
libtpu: 0.0.40
codegen_flags: <defaults>
</compile_context>

<pallas_src>
import jax
import jax.numpy as jnp
from jax.experimental import pallas as pl
from jax.experimental.pallas import tpu as pltpu

# ---- model dims (small, consistent with the module) ----
B = 2       # batch
S = 8       # sequence length
H = 32      # hidden size ("size" in GatedConnection)
M = B * S   # flattened rows


def gated_connection_kernel(x_ref, y_ref, w_ref, b_ref, out_ref):
    x = x_ref[...]                      # (M, H)  f32, VMEM
    y = y_ref[...]                      # (M, H)  f32, VMEM
    wx = w_ref[0:1, :]                  # (1, H)  row vector (gate weight for x)
    wy = w_ref[1:2, :]                  # (1, H)  row vector (gate weight for y)
    b = b_ref[0]                        # scalar bias from SMEM

    # Gate logit == cat((x, y), -1) @ W_gate + b_gate, computed without the
    # MXU or any lane-axis concatenation: VPU fma + XLU lane reduce.
    logit = jnp.sum(x * wx + y * wy, axis=-1, keepdims=True) + b   # (M, 1) f32

    g = jax.nn.sigmoid(logit)           # EUP transcendental, (M, 1)
    out_ref[...] = g * y + x            # broadcast over H, single VPU fma


def gated_connection(x, y, w_gate, b_gate):
    """x, y: (B, S, H) f32.

    w_gate: (2H, 1) f32 — the transpose of nn.Linear(2H, 1).weight, taken
            BEFORE any slicing, so rows [:H] correspond to x and rows [H:]
            to y (matching cat((x, y), -1) ordering).
    b_gate: (1,) f32.
    """
    assert w_gate.shape == (2 * H, 1), w_gate.shape
    assert b_gate.shape == (1,), b_gate.shape

    x2 = x.reshape(M, H).astype(jnp.float32)
    y2 = y.reshape(M, H).astype(jnp.float32)
    # Pack [wx; wy] as a single (2, H) row-vector buffer (one DMA instead of two);
    # reshape keeps ordering: row 0 = w_gate[:H, 0] (x part), row 1 = w_gate[H:, 0] (y part).
    w_packed = w_gate.reshape(2, H).astype(jnp.float32)
    b = b_gate.reshape(1).astype(jnp.float32)

    out = pl.pallas_call(
        gated_connection_kernel,
        out_shape=jax.ShapeDtypeStruct((M, H), jnp.float32),
        in_specs=[
            pl.BlockSpec(memory_space=pltpu.MemorySpace.VMEM),   # x  (full array)
            pl.BlockSpec(memory_space=pltpu.MemorySpace.VMEM),   # y  (full array)
            pl.BlockSpec(memory_space=pltpu.MemorySpace.VMEM),   # packed gate weight (2, H)
            pl.BlockSpec(memory_space=pltpu.MemorySpace.SMEM),   # bias scalar
        ],
        out_specs=pl.BlockSpec(memory_space=pltpu.MemorySpace.VMEM),
    )(x2, y2, w_packed, b)
    return out.reshape(B, S, H)


def _reference(x, y, w_gate, b_gate):
    """Pure-JAX reference mirroring the PyTorch module (dropout = identity)."""
    z = jnp.concatenate([x, y], axis=-1)                 # (B, S, 2H)
    g = jax.nn.sigmoid(z @ w_gate + b_gate)              # (B, S, 1)
    return g * y + x


if __name__ == "__main__":
    key = jax.random.PRNGKey(0)
    k_x, k_y, k_w, _ = jax.random.split(key, 4)

    # Parameters (weight stored pre-transposed so that logit = z @ w + b).
    w_gate = 0.1 * jax.random.normal(k_w, (2 * H, 1), jnp.float32)
    b_gate = jnp.zeros((1,), jnp.float32)   # nn.init.constant_(bias, 0.0)

    x = jax.random.normal(k_x, (B, S, H), jnp.float32)
    y = jax.random.normal(k_y, (B, S, H), jnp.float32)

    out = gated_connection(x, y, w_gate, b_gate)
    out = jax.block_until_ready(out)

    ref = _reference(x, y, w_gate, b_gate)
    assert out.shape == (B, S, H)
    assert jnp.allclose(out, ref, atol=1e-5, rtol=1e-5)

    print("KERNEL_OK")
</pallas_src>

<mosaic_0001>
module attributes {stable_mosaic.version = 11 : i64} {
  func.func @gated_connection_kernel(%arg0: memref<16x32xf32, #tpu.memory_space<vmem>>, %arg1: memref<16x32xf32, #tpu.memory_space<vmem>>, %arg2: memref<2x32xf32, #tpu.memory_space<vmem>>, %arg3: memref<1xf32, #tpu.memory_space<smem>>, %arg4: memref<16x32xf32, #tpu.memory_space<vmem>>) attributes {dimension_semantics = [], scalar_prefetch = 0 : i64, scratch_operands = 0 : i64, tpu.core_type = #tpu.core_type<tc>} {
    %c0 = arith.constant 0 : index
    %c0_0 = arith.constant 0 : index
    %0 = vector.load %arg0[%c0, %c0_0] : memref<16x32xf32, #tpu.memory_space<vmem>>, vector<16x32xf32>
    %c0_1 = arith.constant 0 : index
    %c0_2 = arith.constant 0 : index
    %1 = vector.load %arg1[%c0_1, %c0_2] : memref<16x32xf32, #tpu.memory_space<vmem>>, vector<16x32xf32>
    %c0_3 = arith.constant 0 : index
    %c0_4 = arith.constant 0 : index
    %2 = vector.load %arg2[%c0_3, %c0_4] : memref<2x32xf32, #tpu.memory_space<vmem>>, vector<1x32xf32>
    %c1 = arith.constant 1 : index
    %c0_5 = arith.constant 0 : index
    %3 = vector.load %arg2[%c1, %c0_5] : memref<2x32xf32, #tpu.memory_space<vmem>>, vector<1x32xf32>
    %c0_6 = arith.constant 0 : index
    %4 = memref.load %arg3[%c0_6] : memref<1xf32, #tpu.memory_space<smem>>
    %5 = vector.broadcast %2 : vector<1x32xf32> to vector<16x32xf32>
    %6 = arith.mulf %0, %5 : vector<16x32xf32>
    %7 = vector.broadcast %3 : vector<1x32xf32> to vector<16x32xf32>
    %8 = arith.mulf %1, %7 : vector<16x32xf32>
    %9 = arith.addf %6, %8 : vector<16x32xf32>
    %cst = arith.constant dense<0.000000e+00> : vector<16xf32>
    %10 = vector.multi_reduction <add>, %9, %cst [1] : vector<16x32xf32> to vector<16xf32>
    %11 = vector.shape_cast %10 : vector<16xf32> to vector<16x1xf32>
    %12 = vector.broadcast %4 : f32 to vector<16x1xf32>
    %13 = arith.addf %11, %12 : vector<16x1xf32>
    %14 = arith.negf %13 : vector<16x1xf32>
    %15 = math.exp %14 : vector<16x1xf32>
    %cst_7 = arith.constant 1.000000e+00 : f32
    %16 = vector.broadcast %cst_7 : f32 to vector<16x1xf32>
    %17 = arith.addf %16, %15 : vector<16x1xf32>
    %18 = arith.divf %16, %17 : vector<16x1xf32>
    %19 = vector.broadcast %18 : vector<16x1xf32> to vector<16x32xf32>
    %20 = arith.mulf %19, %1 : vector<16x32xf32>
    %21 = arith.addf %20, %0 : vector<16x32xf32>
    %c0_8 = arith.constant 0 : index
    %c0_9 = arith.constant 0 : index
    %22 = vector.load %arg4[%c0_8, %c0_9] : memref<16x32xf32, #tpu.memory_space<vmem>>, vector<16x32xf32>
    tpu.vector_store %arg4[%c0_8, %c0_9], %21 {strides = array<i32>} : memref<16x32xf32, #tpu.memory_space<vmem>>, vector<16x32xf32>,
    return
  }
}

</mosaic_0001>

<bundles_post_ra>
// kernel: tpu_custom_call.1
= control target key start
LH: loop header
LB: loop body
LE: loop exit
PB: predicated region body
PF: predicated region fallthrough
CT: control target
= control target key end

     0   :  { %10 = vsyncpa [#allocation4], 0  ;;  %s300_s0 = inlined_call_operand.hbm [shape: f32[16,32], index: 0, kind: input, shape index: {}]   ;;  %s301_s1 = inlined_call_operand.hbm [shape: f32[16,32], index: 1, kind: input, shape index: {}]   ;;  %s302_s2 = inlined_call_operand.vmem [shape: f32[2,32], index: 2, kind: input, shape index: {}]   ;;  %s303_s3 = inlined_call_operand.<no memory space> [shape: f32[1], index: 3, kind: input, shape index: {}]   ;;  %s304_s4 = inlined_call_operand.hbm [shape: f32[16,32], index: 4, kind: output, shape index: {}]  }
   0x1   :  { %11 = vsyncpa [#allocation7], 0 }
   0x2   :  { %12 = vsyncpa [#allocation5], 0  ;;  %s17_s17 = sshll.u32 %s300_s0, 4  ;;  %s235_s18 = smov [#allocation3]   ;;  %s18_s17 = int_to_ptr.hbm [resolvable:$true] %s17_s17 }
   0x3   :  { %s19_s19 = sshll.u32 %s235_s18, 4  ;;  %s30_s22 = sshll.u32 %s301_s1, 4  ;;  %s20_s19 = int_to_ptr.vmem [resolvable:$true] %s19_s19  ;;  %s31_s22 = int_to_ptr.hbm [resolvable:$true] %s30_s22 }
   0x4   :  { %s236_s23 = smov 128   ;;  %s237_s24 = smov 8  }
   0x5   :  { %25 = dma.hbm_to_vmem [thread:$0]  %s18_s17, 256, %s20_s19, [#allocation4], %s236_s23, %s236_s23, %s237_s24  }
   0x6   :  { %s238_s25 = smov [#allocation6]  }
   0x7   :  { %s32_s26 = sshll.u32 %s238_s25, 4  ;;  %s33_s26 = int_to_ptr.vmem [resolvable:$true] %s32_s26 }
   0x8   :  { %38 = dma.hbm_to_vmem [thread:$0]  %s31_s22, 256, %s33_s26, [#allocation7], %s236_s23, %s236_s23, %s237_s24  }
   0x9   :  { %229 = dma.done.wait [#allocation4], 256  }
   0xa   :  { %230 = vsyncadd [#allocation4], 4294967040 }
   0xb   :  { %231 = dma.done.wait [#allocation7], 256  }
   0xc   :  { %232 = vsyncadd [#allocation7], 4294967040  ;;  %v51_v0 = vld [vmem:[#allocation3] sm:$0xff]  ;;  %v53_v1 = vld [vmem:[#allocation6] sm:$0xff]  ;;  %vm66_vm0 = vcmask 261120   ;;  %v73_v14 = vstv %s303_s3  ;;  %s126_s7 = sshll.u32 %s304_s4, 4  ;;  %s127_s7 = int_to_ptr.hbm [resolvable:$true] %s126_s7 }
   0xd   :  { %v147_v2 = vld [vmem:[%s302_s2] ss:$0 sm:$0xff]  ;;  %v148_v3 = vld [vmem:[%s302_s2 + $0x1] ss:$0 sm:$0xff]  ;;  %v283_v4 = vld [vmem:[#allocation3 + $0x8] sm:$0xff]  ;;  %s239_s2 = smov [#allocation8]  }
   0xe   :  { %v54_v5 = vld [vmem:[#allocation6 + $0x8] sm:$0xff]  ;;  %v59_v6 = vmul.f32 %v147_v2, %v51_v0  ;;  %v62_v7 = vmul.f32 %v148_v3, %v53_v1  ;;  %v60_v9 = vmul.f32 %v147_v2, %v283_v4  ;;  %s124_s3 = sshll.u32 %s239_s2, 4  ;;  %s125_s3 = int_to_ptr.vmem [resolvable:$true] %s124_s3 }
   0xf   :  { %v63_v10 = vmul.f32 %v148_v3, %v54_v5 }
  0x10   :  { %v64_v8 = vadd.f32 %v62_v7, %v59_v6 }
  0x11   :  { %v65_v12 = vadd.f32 %v63_v10, %v60_v9 }
  0x12   :  { %v67_v11 = vsel %vm66_vm0, %v64_v8, 0.0 }
  0x13   :  { %68 = vadd.xlane.f32.xlu0 %v67_v11  ;;  %v70_v13 = vsel %vm66_vm0, %v65_v12, 0.0 }
  0x1b   :  { %71 = vadd.xlane.f32.xlu0 %v70_v13 }
  0x86   :  { %v69_v15 = vpop.xlane.xlu0 %68 }
  0x87   :  { %v74_v16 = vadd.f32 %v73_v14, %v69_v15 }
  0x89   :  { %v140_v17 = vmul.f32 -1.442695, %v74_v16 }
  0x8b   :  { %149 = vpow2.f32 %v140_v17 }
  0x8e   :  { %v72_v18 = vpop.xlane.xlu0 %71 }
  0x8f   :  { %v75_v19 = vadd.f32 %v73_v14, %v72_v18 }
  0x91   :  { %v150_v20 = vpop.eup %149  ;;  %v141_v21 = vmul.f32 -1.442695, %v75_v19 }
  0x92   :  { %v82_v22 = vadd.f32 1.0, %v150_v20 }
  0x93   :  { %151 = vpow2.f32 %v141_v21 }
  0x94   :  { %153 = vrcp.f32 %v82_v22  ;;  %v95_v28 = vand.u32 2147483648, %v82_v22  ;;  %v93_v30 = vand.u32 2147483647, %v82_v22  ;;  %vm89_vm2 = vweird.f32 %v82_v22 }
  0x96   :  { %v96_v33 = vor.u32 1.1754944e-38, %v95_v28  ;;  %vm94_vm4 = vcmp.eq.f32.partialorder %v93_v30, 8.507059e+37 }
  0x99   :  { %v152_v23 = vpop.eup %151 }
  0x9a   :  { %v154_v24 = vpop.eup %153  ;;  %v83_v25 = vadd.f32 1.0, %v152_v23 }
  0x9b   :  { %v85_v26 = vmul.f32 %v154_v24, %v82_v22  ;;  %vm90_vm1 = vweird.f32 %v154_v24 }
  0x9c   :  { %155 = vrcp.f32 %v83_v25  ;;  %vm91_vm3 = vmor %vm89_vm2, %vm90_vm1  ;;  %v110_v39 = vand.u32 2147483648, %v83_v25  ;;  %v108_v41 = vand.u32 2147483647, %v83_v25  ;;  %vm104_vm6 = vweird.f32 %v83_v25 }
  0x9d   :  { %v86_v27 = vsub.f32 1.0, %v85_v26 }
  0x9e   :  { %v111_v44 = vor.u32 1.1754944e-38, %v110_v39  ;;  %vm109_vm8 = vcmp.eq.f32.partialorder %v108_v41, 8.507059e+37 }
  0x9f   :  { %v87_v29 = vmul.f32 %v154_v24, %v86_v27 }
  0xa1   :  { %v88_v31 = vadd.f32 %v154_v24, %v87_v29 }
  0xa2   :  { %v156_v32 = vpop.eup %155 }
  0xa3   :  { %v100_v34 = vmul.f32 %v156_v32, %v83_v25  ;;  %v92_v35 = vsel %vm91_vm3, %v154_v24, %v88_v31  ;;  %vm105_vm5 = vweird.f32 %v156_v32 }
  0xa4   :  { %v97_v36 = vsel %vm94_vm4, %v96_v33, %v92_v35  ;;  %vm106_vm7 = vmor %vm104_vm6, %vm105_vm5 }
  0xa5   :  { %v101_v37 = vsub.f32 1.0, %v100_v34  ;;  %v114_v38 = vmul.f32 %v97_v36, %v53_v1 }
  0xa7   :  { %v102_v40 = vmul.f32 %v156_v32, %v101_v37  ;;  %v116_v42 = vadd.f32 %v114_v38, %v51_v0 }
  0xa9   :  { %v103_v43 = vadd.f32 %v156_v32, %v102_v40  ;;  %118 = vst.msk [vmem:[#allocation8] sm:$0xff] %vm66_vm0, %v116_v42 }
  0xab   :  { %v107_v45 = vsel %vm106_vm7, %v156_v32, %v103_v43 }
  0xac   :  { %v112_v46 = vsel %vm109_vm8, %v111_v44, %v107_v45 }
  0xad   :  { %v115_v47 = vmul.f32 %v112_v46, %v54_v5 }
  0xaf   :  { %v117_v48 = vadd.f32 %v115_v47, %v283_v4 }
  0xb1   :  { %119 = vst.msk [vmem:[#allocation8 + $0x8] sm:$0xff] %vm66_vm0, %v117_v48 }
  0xb2   :  { %132 = dma.vmem_to_hbm [thread:$0]  %s125_s3, 256, %s127_s7, [#allocation5], %s236_s23, %s236_s23, %s237_s24  }
  0xb3   :  { %233 = dma.done.wait [#allocation5], 256  }
  0xb4   :  { %234 = vsyncadd [#allocation5], 4294967040 }
  0xb5   :  { %137 = vsyncpa [#allocation4], 1 }
  0xb6   :  { %138 = vsyncpa [#allocation7], 1 }
  0xb7   :  { %139 = vsyncpa [#allocation5], 1 }

</bundles_post_ra>
